<compile_context>
chip_gen: v5e
topology: v5e:2x2
jax: 0.10.0
libtpu: 0.0.40
codegen_flags: <defaults>
</compile_context>

<pallas_src>
import numpy as np
import jax
import jax.numpy as jnp
from jax.experimental import pallas as pl
from jax.experimental.pallas import tpu as pltpu

LANE = 128
SUBLANE = 8


def _round_up(x, m):
    return ((x + m - 1) // m) * m


def qnet_kernel(x_ref, w1_ref, b1_ref, w2_ref, b2_ref, out_ref):
    # fc1: (TB, S)bf16 @ (S, H)bf16 -> f32 accumulate on the MXU.
    h = jnp.dot(x_ref[...], w1_ref[...], preferred_element_type=jnp.float32)
    # Bias + ReLU in f32 on the VPU.
    h = jnp.maximum(h + b1_ref[...], 0.0)
    # out: (TB, H)bf16 @ (H, A_pad)bf16 -> f32 accumulate.
    o = jnp.dot(h.astype(jnp.bfloat16), w2_ref[...],
                preferred_element_type=jnp.float32)
    out_ref[...] = (o + b2_ref[...]).astype(out_ref.dtype)


def qnet_discrimination_forward(x, w1, b1, w2, b2, *, tile_b=512):
    """Forward pass of QNet_discrimination.

    x:  (B, S) float32
    w1: (S, H) float32   (transposed vs. PyTorch fc1.weight)
    b1: (1, H) float32
    w2: (H, A) float32   (transposed vs. PyTorch out.weight)
    b2: (1, A) float32
    returns: (B, A) float32
    """
    B, S = x.shape
    H = w1.shape[1]
    A = w2.shape[1]

    # Lane-pad the output feature dim to a multiple of 128 -> unmasked stores.
    A_pad = _round_up(max(A, LANE), LANE)
    w2p = jnp.zeros((H, A_pad), w2.dtype).at[:, :A].set(w2)
    b2p = jnp.zeros((1, A_pad), b2.dtype).at[:, :A].set(b2)

    # Batch tiling: TILE_B multiple of 8 (f32 sublanes), capped at tile_b.
    TILE_B = min(tile_b, _round_up(B, SUBLANE))
    B_pad = _round_up(B, TILE_B)
    if B_pad != B:
        x = jnp.pad(x, ((0, B_pad - B), (0, 0)))

    # bf16 MXU operands; accumulation stays f32 inside the kernel.
    x_bf = x.astype(jnp.bfloat16)
    w1_bf = w1.astype(jnp.bfloat16)
    w2_bf = w2p.astype(jnp.bfloat16)

    grid = (B_pad // TILE_B,)

    flops = 2 * B_pad * (S * H + H * A_pad)
    bytes_accessed = (x_bf.size * 2 + w1_bf.size * 2 + w2_bf.size * 2
                      + b1.size * 4 + b2p.size * 4 + B_pad * A_pad * 4)

    out = pl.pallas_call(
        qnet_kernel,
        out_shape=jax.ShapeDtypeStruct((B_pad, A_pad), jnp.float32),
        grid=grid,
        in_specs=[
            # Activations: tiled over the batch grid (pipelined / double-buffered).
            pl.BlockSpec((TILE_B, S), lambda i: (i, 0)),
            # Weights / biases: constant index_map -> resident in VMEM.
            pl.BlockSpec((S, H), lambda i: (0, 0)),
            pl.BlockSpec((1, H), lambda i: (0, 0)),
            pl.BlockSpec((H, A_pad), lambda i: (0, 0)),
            pl.BlockSpec((1, A_pad), lambda i: (0, 0)),
        ],
        out_specs=pl.BlockSpec((TILE_B, A_pad), lambda i: (i, 0)),
        compiler_params=pltpu.CompilerParams(
            dimension_semantics=("parallel",)),
        cost_estimate=pl.CostEstimate(flops=flops, transcendentals=0,
                                      bytes_accessed=bytes_accessed),
    )(x_bf, w1_bf, b1, w2_bf, b2p)

    return out[:B, :A]


def init_params(key, state_dim, action_dim, hidden_dim=128, init_w=0.1):
    """Deterministic parameter init mirroring the PyTorch __init__ scheme."""
    k1, k2, k3, k4 = jax.random.split(key, 4)
    # fc1.weight ~ fanin_init(size=(hidden, state)) -> uniform(+-1/sqrt(hidden_dim))
    v1 = 1.0 / np.sqrt(hidden_dim)
    w1 = jax.random.uniform(k1, (state_dim, hidden_dim), jnp.float32, -v1, v1)
    # fc1.bias: default nn.Linear init -> uniform(+-1/sqrt(state_dim))
    vb1 = 1.0 / np.sqrt(state_dim)
    b1 = jax.random.uniform(k2, (1, hidden_dim), jnp.float32, -vb1, vb1)
    # out.weight ~ Normal(mean=-init_w, std=init_w)
    w2 = -init_w + init_w * jax.random.normal(k3, (hidden_dim, action_dim), jnp.float32)
    # out.bias: default nn.Linear init -> uniform(+-1/sqrt(hidden_dim))
    vb2 = 1.0 / np.sqrt(hidden_dim)
    b2 = jax.random.uniform(k4, (1, action_dim), jnp.float32, -vb2, vb2)
    return w1, b1, w2, b2


if __name__ == "__main__":
    key = jax.random.PRNGKey(0)
    kx, kp = jax.random.split(key)

    # Small shapes; B=10 deliberately not a multiple of 8 to exercise padding.
    B, state_dim, hidden_dim, action_dim = 10, 32, 128, 8

    x = jax.random.normal(kx, (B, state_dim), jnp.float32)
    w1, b1, w2, b2 = init_params(kp, state_dim, action_dim, hidden_dim)

    out = qnet_discrimination_forward(x, w1, b1, w2, b2)
    out = jax.block_until_ready(out)

    # Pure-JAX reference, emulating the bf16 MXU operand rounding (f32 accum).
    xb = x.astype(jnp.bfloat16).astype(jnp.float32)
    w1b = w1.astype(jnp.bfloat16).astype(jnp.float32)
    w2b = w2.astype(jnp.bfloat16).astype(jnp.float32)
    h = jnp.maximum(xb @ w1b + b1, 0.0)
    ref = h.astype(jnp.bfloat16).astype(jnp.float32) @ w2b + b2
    np.testing.assert_allclose(np.asarray(out), np.asarray(ref),
                               rtol=2e-3, atol=2e-3)

    # Sanity check vs. full-f32 math (loose tolerance for bf16 operands).
    ref_f32 = jnp.maximum(x @ w1 + b1, 0.0) @ w2 + b2
    np.testing.assert_allclose(np.asarray(out), np.asarray(ref_f32),
                               rtol=5e-2, atol=5e-2)

    print("KERNEL_OK")
</pallas_src>

<mosaic_0001>
module attributes {stable_mosaic.version = 11 : i64} {
  func.func @qnet_kernel(%arg0: i32, %arg1: memref<16x32xbf16, #tpu.memory_space<vmem>>, %arg2: memref<32x128xbf16, #tpu.memory_space<vmem>>, %arg3: memref<1x128xf32, #tpu.memory_space<vmem>>, %arg4: memref<128x128xbf16, #tpu.memory_space<vmem>>, %arg5: memref<1x128xf32, #tpu.memory_space<vmem>>, %arg6: memref<16x128xf32, #tpu.memory_space<vmem>>) attributes {dimension_semantics = [#tpu.dimension_semantics<parallel>], iteration_bounds = array<i64: 1>, scalar_prefetch = 0 : i64, scratch_operands = 0 : i64, tpu.core_type = #tpu.core_type<tc>, window_params = [{transform_indices = @transform_0, window_bounds = array<i64: 16, 32>}, {pipeline_mode = #tpu.pipeline_mode<synchronous>, transform_indices = @transform_1, window_bounds = array<i64: 32, 128>}, {pipeline_mode = #tpu.pipeline_mode<synchronous>, transform_indices = @transform_2, window_bounds = array<i64: 1, 128>}, {pipeline_mode = #tpu.pipeline_mode<synchronous>, transform_indices = @transform_3, window_bounds = array<i64: 128, 128>}, {pipeline_mode = #tpu.pipeline_mode<synchronous>, transform_indices = @transform_4, window_bounds = array<i64: 1, 128>}, {transform_indices = @transform_5, window_bounds = array<i64: 16, 128>}]} {
    %c0 = arith.constant 0 : index
    %c0_0 = arith.constant 0 : index
    %0 = vector.load %arg1[%c0, %c0_0] : memref<16x32xbf16, #tpu.memory_space<vmem>>, vector<16x32xbf16>
    %c0_1 = arith.constant 0 : index
    %c0_2 = arith.constant 0 : index
    %1 = vector.load %arg2[%c0_1, %c0_2] : memref<32x128xbf16, #tpu.memory_space<vmem>>, vector<32x128xbf16>
    %cst = arith.constant dense<0.000000e+00> : vector<16x128xf32>
    %2 = tpu.matmul %0, %1, %cst {dimension_numbers = #tpu.dot_dimension_numbers<[1], [0], [0], [1], [0, 0, 1, 1], [], []>} : vector<16x32xbf16>, vector<32x128xbf16>, vector<16x128xf32> -> vector<16x128xf32>
    %c0_3 = arith.constant 0 : index
    %c0_4 = arith.constant 0 : index
    %3 = vector.load %arg3[%c0_3, %c0_4] : memref<1x128xf32, #tpu.memory_space<vmem>>, vector<1x128xf32>
    %4 = vector.broadcast %3 : vector<1x128xf32> to vector<16x128xf32>
    %5 = arith.addf %2, %4 : vector<16x128xf32>
    %cst_5 = arith.constant 0.000000e+00 : f32
    %6 = vector.broadcast %cst_5 : f32 to vector<16x128xf32>
    %7 = arith.maximumf %5, %6 : vector<16x128xf32>
    %8 = arith.truncf %7 : vector<16x128xf32> to vector<16x128xbf16>
    %c0_6 = arith.constant 0 : index
    %c0_7 = arith.constant 0 : index
    %9 = vector.load %arg4[%c0_6, %c0_7] : memref<128x128xbf16, #tpu.memory_space<vmem>>, vector<128x128xbf16>
    %cst_8 = arith.constant dense<0.000000e+00> : vector<16x128xf32>
    %10 = tpu.matmul %8, %9, %cst_8 {dimension_numbers = #tpu.dot_dimension_numbers<[1], [0], [0], [1], [0, 0, 1, 1], [], []>} : vector<16x128xbf16>, vector<128x128xbf16>, vector<16x128xf32> -> vector<16x128xf32>
    %c0_9 = arith.constant 0 : index
    %c0_10 = arith.constant 0 : index
    %11 = vector.load %arg5[%c0_9, %c0_10] : memref<1x128xf32, #tpu.memory_space<vmem>>, vector<1x128xf32>
    %12 = vector.broadcast %11 : vector<1x128xf32> to vector<16x128xf32>
    %13 = arith.addf %10, %12 : vector<16x128xf32>
    %c0_11 = arith.constant 0 : index
    %c0_12 = arith.constant 0 : index
    %14 = vector.load %arg6[%c0_11, %c0_12] : memref<16x128xf32, #tpu.memory_space<vmem>>, vector<16x128xf32>
    tpu.vector_store %arg6[%c0_11, %c0_12], %13 {strides = array<i32>} : memref<16x128xf32, #tpu.memory_space<vmem>>, vector<16x128xf32>,
    return
  }
  func.func @transform_0(%arg0: i32) -> (i32, i32) {
    %c0_i32 = arith.constant 0 : i32
    %c0_i32_0 = arith.constant 0 : i32
    return %arg0, %c0_i32 : i32, i32
  }
  func.func @transform_1(%arg0: i32) -> (i32, i32) {
    %c0_i32 = arith.constant 0 : i32
    %c0_i32_0 = arith.constant 0 : i32
    %c0_i32_1 = arith.constant 0 : i32
    return %c0_i32, %c0_i32_0 : i32, i32
  }
  func.func @transform_2(%arg0: i32) -> (i32, i32) {
    %c0_i32 = arith.constant 0 : i32
    %c0_i32_0 = arith.constant 0 : i32
    %c0_i32_1 = arith.constant 0 : i32
    return %c0_i32, %c0_i32_0 : i32, i32
  }
  func.func @transform_3(%arg0: i32) -> (i32, i32) {
    %c0_i32 = arith.constant 0 : i32
    %c0_i32_0 = arith.constant 0 : i32
    %c0_i32_1 = arith.constant 0 : i32
    return %c0_i32, %c0_i32_0 : i32, i32
  }
  func.func @transform_4(%arg0: i32) -> (i32, i32) {
    %c0_i32 = arith.constant 0 : i32
    %c0_i32_0 = arith.constant 0 : i32
    %c0_i32_1 = arith.constant 0 : i32
    return %c0_i32, %c0_i32_0 : i32, i32
  }
  func.func @transform_5(%arg0: i32) -> (i32, i32) {
    %c0_i32 = arith.constant 0 : i32
    %c0_i32_0 = arith.constant 0 : i32
    return %arg0, %c0_i32 : i32, i32
  }
}

</mosaic_0001>

<bundles_post_ra>
// kernel: tpu_custom_call.1
= control target key start
LH: loop header
LB: loop body
LE: loop exit
PB: predicated region body
PF: predicated region fallthrough
CT: control target
= control target key end

     0   :  { %10 = vsyncpa [#allocation3], 0  ;;  %s445_s0 = inlined_call_operand.hbm [shape: bf16[16,32], index: 0, kind: input, shape index: {}]   ;;  %s446_s1 = inlined_call_operand.hbm [shape: bf16[32,128], index: 1, kind: input, shape index: {}]   ;;  %s447_s2 = inlined_call_operand.vmem [shape: f32[1,128], index: 2, kind: input, shape index: {}]   ;;  %s448_s3 = inlined_call_operand.hbm [shape: bf16[128,128], index: 3, kind: input, shape index: {}]   ;;  %s449_s4 = inlined_call_operand.vmem [shape: f32[1,128], index: 4, kind: input, shape index: {}]   ;;  %s450_s5 = inlined_call_operand.hbm [shape: f32[16,128], index: 5, kind: output, shape index: {}]  }
   0x1   :  { %11 = vsyncpa [#allocation6], 0 }
   0x2   :  { %12 = vsyncpa [#allocation4], 0  ;;  %s30_s20 = sshll.u32 %s446_s1, 4  ;;  %s389_s21 = smov [#allocation5]   ;;  %s31_s20 = int_to_ptr.hbm [resolvable:$true] %s30_s20 }
   0x3   :  { %s32_s22 = sshll.u32 %s389_s21, 4  ;;  %s17_s25 = sshll.u32 %s445_s0, 4  ;;  %s33_s22 = int_to_ptr.vmem [resolvable:$true] %s32_s22  ;;  %s18_s25 = int_to_ptr.hbm [resolvable:$true] %s17_s25 }
   0x4   :  { %s390_s26 = smov 64   ;;  %s391_s27 = smov 4  }
   0x5   :  { %38 = dma.hbm_to_vmem [thread:$0]  %s31_s20, 256, %s33_s22, [#allocation6], %s390_s26, %s390_s26, %s391_s27  }
   0x6   :  { %s392_s28 = smov [#allocation2]   ;;  %s45_s7 = sshll.u32 %s448_s3, 4  ;;  %s46_s7 = int_to_ptr.hbm [resolvable:$true] %s45_s7 }
   0x7   :  { %s19_s29 = sshll.u32 %s392_s28, 4  ;;  %s393_s1 = smov [#allocation7]   ;;  %s20_s29 = int_to_ptr.vmem [resolvable:$true] %s19_s29 }
   0x8   :  { %25 = dma.hbm_to_vmem [thread:$0]  %s18_s25, 128, %s20_s29, [#allocation3], %s390_s26, %s390_s26, %s391_s27  }
   0x9   :  { %s47_s8 = sshll.u32 %s393_s1, 4  ;;  %s48_s8 = int_to_ptr.vmem [resolvable:$true] %s47_s8 }
   0xa   :  { %53 = dma.hbm_to_vmem [thread:$0]  %s46_s7, 1024, %s48_s8, [#allocation6], %s390_s26, %s390_s26, %s391_s27  }
   0xb   :  { %383 = dma.done.wait [#allocation3], 128  }
   0xc   :  { %384 = vsyncadd [#allocation3], 4294967168 }
   0xd   :  { %385 = dma.done.wait [#allocation6], 1280  }
   0xe   :  { %386 = vsyncadd [#allocation6], 4294966016  ;;  %v268_v0 = vld [vmem:[#allocation5 + $0x8] sm:$0xff]  ;;  %v267_v2 = vld [vmem:[#allocation5] sm:$0xff]  ;;  %vm96_vm0 = vcmask 261120   ;;  %s394_s11 = smov [#allocation8]  }
   0xf   :  { %v276_v1 = vld [vmem:[#allocation7 + $0x38] sm:$0xff]  ;;  %106 = vmatpush.bf16.msra.mxu0 %v268_v0  ;;  %v275_v3 = vld [vmem:[#allocation7 + $0x30] sm:$0xff]  ;;  %v266_v4 = vld [vmem:[#allocation2] sm:$0xff]  ;;  %s205_s12 = sshll.u32 %s394_s11, 4  ;;  %s395_s15 = smov 128   ;;  %s206_s12 = int_to_ptr.vmem [resolvable:$true] %s205_s12 }
  0x10   :  { %185 = vmatpush.bf16.msra.mxu1 %v276_v1  ;;  %v274_v5 = vld [vmem:[#allocation7 + $0x28] sm:$0xff]  ;;  %v273_v6 = vld [vmem:[#allocation7 + $0x20] sm:$0xff]  ;;  %v272_v7 = vld [vmem:[#allocation7 + $0x18] sm:$0xff]  ;;  %s396_s16 = smov 8  }
  0x11   :  { %v271_v8 = vld [vmem:[#allocation7 + $0x10] sm:$0xff]  ;;  %v270_v9 = vld [vmem:[#allocation7 + $0x8] sm:$0xff]  ;;  %v269_v10 = vld [vmem:[#allocation7] sm:$0xff] }
  0x12   :  { %v285_v12 = vld [vmem:[%s447_s2] ss:$0 sm:$0xff]  ;;  %s207_s2 = sshll.u32 %s450_s5, 4  ;;  %s208_s2 = int_to_ptr.hbm [resolvable:$true] %s207_s2 }
  0x13   :  { %107 = vmatpush.bf16.msra.mxu0 %v267_v2  ;;  %v286_v19 = vld [vmem:[%s449_s4] ss:$0 sm:$0xff] }
  0x14   :  { %186 = vmatpush.bf16.msra.mxu1 %v275_v3 }
  0x16   :  { %233 = vmatmul.msk.bf16.vlgmr.msra.gmra.mxu0 %vm96_vm0, %v266_v4 }
  0x18   :  { %187 = vmatpush.bf16.msra.mxu1 %v274_v5 }
  0x1c   :  { %188 = vmatpush.bf16.msra.mxu1 %v273_v6 }
  0x20   :  { %189 = vmatpush.bf16.msra.mxu1 %v272_v7 }
  0x24   :  { %190 = vmatpush.bf16.msra.mxu1 %v271_v8 }
  0x28   :  { %191 = vmatpush.bf16.msra.mxu1 %v270_v9 }
  0x2c   :  { %192 = vmatpush.bf16.msra.mxu1 %v269_v10 }
  0x93   :  { %v109_v11 = vpop.f32.mrf.mxu0 }
  0x94   :  { %v110_v13 = vadd.f32 %v285_v12, %v109_v11 }
  0x96   :  { %v114_v16 = vmax.f32 %v110_v13, 0.0 }
  0x9b   :  { %v111_v14 = vpop.f32.mrf.mxu0 }
  0x9c   :  { %v112_v15 = vadd.f32 %v285_v12, %v111_v14 }
  0x9e   :  { %v115_v17 = vmax.f32 %v112_v15, 0.0 }
  0xa0   :  { %v116_v18 = vpack.c.bf16 %v115_v17, %v114_v16 }
  0xa2   :  { %193 = vmatmul.bf16.vlgmr.msra.gmra.mxu1 %v116_v18 }
 0x11f   :  { %v194_v20 = vpop.f32.mrf.mxu1 }
 0x120   :  { %v195_v21 = vadd.f32 %v286_v19, %v194_v20 }
 0x122   :  { %199 = vst [vmem:[#allocation8] sm:$0xff] %v195_v21 }
 0x127   :  { %v196_v22 = vpop.f32.mrf.mxu1 }
 0x128   :  { %v197_v23 = vadd.f32 %v286_v19, %v196_v22 }
 0x12a   :  { %200 = vst [vmem:[#allocation8 + $0x8] sm:$0xff] %v197_v23 }
 0x12b   :  { %213 = dma.vmem_to_hbm [thread:$0]  %s206_s12, 256, %s208_s2, [#allocation4], %s395_s15, %s395_s15, %s396_s16  }
 0x12c   :  { %387 = dma.done.wait [#allocation4], 256  }
 0x12d   :  { %388 = vsyncadd [#allocation4], 4294967040 }
 0x12e   :  { %218 = vsyncpa [#allocation3], 1 }
 0x12f   :  { %219 = vsyncpa [#allocation6], 1 }
 0x130   :  { %220 = vsyncpa [#allocation4], 1 }

</bundles_post_ra>
